<compile_context>
chip_gen: v7x
topology: tpu7x:2x2x1
jax: 0.10.0
libtpu: 0.0.40
codegen_flags: <defaults>
</compile_context>

<pallas_src>
import functools
import math

import jax
import jax.numpy as jnp
from jax.experimental import pallas as pl
from jax.experimental.pallas import tpu as pltpu


def _round_up(x: int, m: int) -> int:
    return (x + m - 1) // m * m


def _mpe_psn_kernel(thr_ref, coef_ref, x_ref, u_ref, o_ref, loss_ref, *, tau):
    x = x_ref[0]            # (T, TILE_D) float32
    u = u_ref[0]            # (T, TILE_D) float32 uniforms in [0, 1)

    # keep = 1 - bernoulli(sigmoid(x)); bernoulli = (u < sig)  =>  keep = (u >= sig)
    #   u >= 1/(1 + e^{-x})  <=>  u * (1 + e^{-x}) >= 1
    # (one EUP exp, no sigmoid reciprocal; boolean select instead of float mask)
    keep = (u * (1.0 + jnp.exp(-x))) >= 1.0

    mem_hat = jnp.where(keep, x, 0.0)                # (1 - bernoulli(sig)) * x

    # Time-shifted mem_hat: row t holds mem_hat[t-1]; row 0 is v_0 = 0.
    # TODO(synk): pltpu.roll(mem_hat, 1, axis=0) + t0 mask rides the free XLU
    # slot on hardware, but has no interpreter path; concatenate is portable.
    zero_row = jnp.zeros((1, x.shape[1]), x.dtype)
    mem_hat_prev = jnp.concatenate([zero_row, mem_hat[:-1, :]], axis=0)

    mem_memo = mem_hat_prev * tau + x

    thr = thr_ref[0]
    o_bool = (mem_memo - thr) > 0.0                  # TriangularSurrogate forward
    o_ref[0] = o_bool.astype(o_ref.dtype)

    mem_real = jnp.where(o_bool, 0.0, mem_memo)      # (1 - o) * mem_memo

    diff = mem_hat - mem_real
    loss_elems = diff * diff * coef_ref[...]         # coef (T, 1) broadcasts over lanes

    # Partial reduce over the time (sublane) axis only -> (1, TILE_D) lane vector.
    loss_ref[0, 0] = jnp.sum(loss_elems, axis=0, keepdims=True)


def mpe_psn_forward(x, coef, threshold, *, key=None, tau=0.25, tile_d_cap=4096):
    """x: (B, T, C, H, W) float. coef: (T,). Returns (o_t same shape as x, mem_loss scalar)."""
    B, T = x.shape[0], x.shape[1]
    feat_shape = x.shape[2:]
    D = math.prod(feat_shape)

    # Lane tile: multiple of 128, capped so ~14 live (T, TILE_D) f32 temporaries
    # plus double-buffered x/u/o blocks stay a few MiB (safe on all generations).
    tile_d = min(int(tile_d_cap), _round_up(D, 128))
    d_pad = _round_up(D, tile_d)
    num_d = d_pad // tile_d

    x2 = x.reshape(B, T, D).astype(jnp.float32)
    if d_pad != D:
        # Padded columns are zero => they contribute exactly 0 to the loss.
        x2 = jnp.pad(x2, ((0, 0), (0, 0), (0, d_pad - D)))

    if key is None:
        key = jax.random.PRNGKey(0)
    u = jax.random.uniform(key, (B, T, d_pad), dtype=jnp.float32)

    coef2 = jnp.reshape(coef.astype(jnp.float32), (T, 1))
    thr = jnp.reshape(jnp.asarray(threshold, dtype=jnp.float32), (1,))

    kernel = functools.partial(_mpe_psn_kernel, tau=float(tau))

    o2, loss_part = pl.pallas_call(
        kernel,
        out_shape=(
            jax.ShapeDtypeStruct((B, T, d_pad), x.dtype),
            jax.ShapeDtypeStruct((B, num_d, 1, tile_d), jnp.float32),
        ),
        grid_spec=pltpu.PrefetchScalarGridSpec(
            num_scalar_prefetch=0,
            grid=(B, num_d),
            in_specs=[
                pl.BlockSpec(memory_space=pltpu.MemorySpace.SMEM),          # threshold
                pl.BlockSpec((T, 1), lambda b, d: (0, 0)),                  # coef (T,1)
                pl.BlockSpec((1, T, tile_d), lambda b, d: (b, 0, d)),       # x
                pl.BlockSpec((1, T, tile_d), lambda b, d: (b, 0, d)),       # uniforms
            ],
            out_specs=[
                pl.BlockSpec((1, T, tile_d), lambda b, d: (b, 0, d)),       # o_t
                pl.BlockSpec((1, 1, 1, tile_d), lambda b, d: (b, d, 0, 0)),  # loss partials
            ],
        ),
        compiler_params=pltpu.CompilerParams(
            # No cross-step carry anymore -> both grid axes are independent.
            dimension_semantics=("parallel", "parallel"),
        ),
    )(thr, coef2, x2, u)

    o = o2[..., :D].reshape((B, T) + tuple(feat_shape))
    # PyTorch .mean() divides by the true element count B*T*C*H*W.
    mem_loss = jnp.sum(loss_part) / jnp.float32(B * T * D)
    return o, mem_loss


if __name__ == "__main__":
    key = jax.random.PRNGKey(0)
    kx, ku = jax.random.split(key)

    B, T, C, H, W = 2, 8, 4, 16, 16
    x = jax.random.normal(kx, (B, T, C, H, W), dtype=jnp.float32)

    # Deterministic parameter init matching the module's __init__:
    threshold = jnp.float32(1.0)                       # nn.Parameter(1.0)
    coef = jnp.full((T,), 1.0 / T, dtype=jnp.float32)  # coef = [1/T] * T

    o_t, mem_loss = mpe_psn_forward(x, coef, threshold, key=ku, tau=0.25)
    jax.block_until_ready((o_t, mem_loss))

    assert o_t.shape == x.shape and o_t.dtype == x.dtype
    # o_t is a binary spike tensor
    assert bool(jnp.all((o_t == 0.0) | (o_t == 1.0)))
    assert mem_loss.shape == () and bool(jnp.isfinite(mem_loss))
    print("KERNEL_OK")
</pallas_src>

<mosaic_0001>
module attributes {stable_mosaic.version = 11 : i64} {
  func.func @_mpe_psn_kernel(%arg0: i32, %arg1: i32, %arg2: memref<1xf32, #tpu.memory_space<smem>>, %arg3: memref<8x1xf32, #tpu.memory_space<vmem>>, %arg4: memref<1x8x1024xf32, #tpu.memory_space<vmem>>, %arg5: memref<1x8x1024xf32, #tpu.memory_space<vmem>>, %arg6: memref<1x8x1024xf32, #tpu.memory_space<vmem>>, %arg7: memref<1x1x1x1024xf32, #tpu.memory_space<vmem>>) attributes {dimension_semantics = [#tpu.dimension_semantics<parallel>, #tpu.dimension_semantics<parallel>], iteration_bounds = array<i64: 2, 1>, scalar_prefetch = 0 : i64, scratch_operands = 0 : i64, tpu.core_type = #tpu.core_type<tc>, window_params = [{transform_indices = @transform_0, window_bounds = array<i64: 1>}, {pipeline_mode = #tpu.pipeline_mode<synchronous>, transform_indices = @transform_1, window_bounds = array<i64: 8, 1>}, {transform_indices = @transform_2, window_bounds = array<i64: 1, 8, 1024>}, {transform_indices = @transform_3, window_bounds = array<i64: 1, 8, 1024>}, {transform_indices = @transform_4, window_bounds = array<i64: 1, 8, 1024>}, {transform_indices = @transform_5, window_bounds = array<i64: 1, 1, 1, 1024>}]} {
    %c0 = arith.constant 0 : index
    %c0_0 = arith.constant 0 : index
    %c0_1 = arith.constant 0 : index
    %0 = vector.load %arg4[%c0, %c0_0, %c0_1] : memref<1x8x1024xf32, #tpu.memory_space<vmem>>, vector<1x8x1024xf32>
    %1 = vector.shape_cast %0 : vector<1x8x1024xf32> to vector<8x1024xf32>
    %c0_2 = arith.constant 0 : index
    %c0_3 = arith.constant 0 : index
    %c0_4 = arith.constant 0 : index
    %2 = vector.load %arg5[%c0_2, %c0_3, %c0_4] : memref<1x8x1024xf32, #tpu.memory_space<vmem>>, vector<1x8x1024xf32>
    %3 = vector.shape_cast %2 : vector<1x8x1024xf32> to vector<8x1024xf32>
    %cst = arith.constant 0.000000e+00 : f32
    %4 = vector.broadcast %cst : f32 to vector<8x1024xf32>
    %5 = arith.subf %4, %1 : vector<8x1024xf32>
    %6 = math.exp %5 : vector<8x1024xf32>
    %cst_5 = arith.constant 1.000000e+00 : f32
    %7 = vector.broadcast %cst_5 : f32 to vector<8x1024xf32>
    %8 = arith.addf %7, %6 : vector<8x1024xf32>
    %9 = arith.mulf %3, %8 : vector<8x1024xf32>
    %cst_6 = arith.constant 1.000000e+00 : f32
    %10 = vector.broadcast %cst_6 : f32 to vector<8x1024xf32>
    %11 = arith.cmpf oge, %9, %10 : vector<8x1024xf32>
    %cst_7 = arith.constant 0.000000e+00 : f32
    %12 = vector.broadcast %cst_7 : f32 to vector<8x1024xf32>
    %13 = arith.select %11, %1, %12 : vector<8x1024xi1>, vector<8x1024xf32>
    %cst_8 = arith.constant 0.000000e+00 : f32
    %14 = vector.broadcast %cst_8 : f32 to vector<1x1024xf32>
    %15 = vector.extract_strided_slice %13 {offsets = [0, 0], sizes = [7, 1024], strides = [1, 1]} : vector<8x1024xf32> to vector<7x1024xf32>
    %16 = tpu.concatenate %14, %15 in 0 : vector<1x1024xf32>, vector<7x1024xf32> -> vector<8x1024xf32>
    %cst_9 = arith.constant 2.500000e-01 : f32
    %17 = vector.broadcast %cst_9 : f32 to vector<8x1024xf32>
    %18 = arith.mulf %16, %17 : vector<8x1024xf32>
    %19 = arith.addf %18, %1 : vector<8x1024xf32>
    %c0_10 = arith.constant 0 : index
    %20 = memref.load %arg2[%c0_10] : memref<1xf32, #tpu.memory_space<smem>>
    %21 = vector.broadcast %20 : f32 to vector<8x1024xf32>
    %22 = arith.subf %19, %21 : vector<8x1024xf32>
    %cst_11 = arith.constant 0.000000e+00 : f32
    %23 = vector.broadcast %cst_11 : f32 to vector<8x1024xf32>
    %24 = arith.cmpf ogt, %22, %23 : vector<8x1024xf32>
    %25 = arith.extui %24 : vector<8x1024xi1> to vector<8x1024xi32>
    %26 = arith.sitofp %25 : vector<8x1024xi32> to vector<8x1024xf32>
    %c0_12 = arith.constant 0 : index
    %c0_13 = arith.constant 0 : index
    %c0_14 = arith.constant 0 : index
    %27 = vector.load %arg6[%c0_12, %c0_13, %c0_14] : memref<1x8x1024xf32, #tpu.memory_space<vmem>>, vector<1x8x1024xf32>
    %28 = vector.shape_cast %27 : vector<1x8x1024xf32> to vector<8x1024xf32>
    %29 = vector.shape_cast %26 : vector<8x1024xf32> to vector<1x8x1024xf32>
    tpu.vector_store %arg6[%c0_12, %c0_13, %c0_14], %29 {strides = array<i32>} : memref<1x8x1024xf32, #tpu.memory_space<vmem>>, vector<1x8x1024xf32>,
    %cst_15 = arith.constant 0.000000e+00 : f32
    %30 = vector.broadcast %cst_15 : f32 to vector<8x1024xf32>
    %31 = arith.select %24, %30, %19 : vector<8x1024xi1>, vector<8x1024xf32>
    %32 = arith.subf %13, %31 : vector<8x1024xf32>
    %33 = arith.mulf %32, %32 : vector<8x1024xf32>
    %c0_16 = arith.constant 0 : index
    %c0_17 = arith.constant 0 : index
    %34 = vector.load %arg3[%c0_16, %c0_17] : memref<8x1xf32, #tpu.memory_space<vmem>>, vector<8x1xf32>
    %35 = vector.broadcast %34 : vector<8x1xf32> to vector<8x1024xf32>
    %36 = arith.mulf %33, %35 : vector<8x1024xf32>
    %cst_18 = arith.constant dense<0.000000e+00> : vector<1024xf32>
    %37 = vector.multi_reduction <add>, %36, %cst_18 [0] : vector<8x1024xf32> to vector<1024xf32>
    %38 = vector.shape_cast %37 : vector<1024xf32> to vector<1x1024xf32>
    %c0_19 = arith.constant 0 : index
    %c0_20 = arith.constant 0 : index
    %c0_21 = arith.constant 0 : index
    %c0_22 = arith.constant 0 : index
    %39 = vector.load %arg7[%c0_19, %c0_20, %c0_21, %c0_22] : memref<1x1x1x1024xf32, #tpu.memory_space<vmem>>, vector<1x1x1x1024xf32>
    %40 = vector.shape_cast %39 : vector<1x1x1x1024xf32> to vector<1x1024xf32>
    %41 = vector.shape_cast %38 : vector<1x1024xf32> to vector<1x1x1x1024xf32>
    tpu.vector_store %arg7[%c0_19, %c0_20, %c0_21, %c0_22], %41 {strides = array<i32>} : memref<1x1x1x1024xf32, #tpu.memory_space<vmem>>, vector<1x1x1x1024xf32>,
    return
  }
  func.func @transform_0(%arg0: i32, %arg1: i32) -> i32 {
    %c0_i32 = arith.constant 0 : i32
    %c0_i32_0 = arith.constant 0 : i32
    return %c0_i32 : i32
  }
  func.func @transform_1(%arg0: i32, %arg1: i32) -> (i32, i32) {
    %c0_i32 = arith.constant 0 : i32
    %c0_i32_0 = arith.constant 0 : i32
    %c0_i32_1 = arith.constant 0 : i32
    return %c0_i32, %c0_i32_0 : i32, i32
  }
  func.func @transform_2(%arg0: i32, %arg1: i32) -> (i32, i32, i32) {
    %c0_i32 = arith.constant 0 : i32
    %c0_i32_0 = arith.constant 0 : i32
    return %arg0, %c0_i32, %arg1 : i32, i32, i32
  }
  func.func @transform_3(%arg0: i32, %arg1: i32) -> (i32, i32, i32) {
    %c0_i32 = arith.constant 0 : i32
    %c0_i32_0 = arith.constant 0 : i32
    return %arg0, %c0_i32, %arg1 : i32, i32, i32
  }
  func.func @transform_4(%arg0: i32, %arg1: i32) -> (i32, i32, i32) {
    %c0_i32 = arith.constant 0 : i32
    %c0_i32_0 = arith.constant 0 : i32
    return %arg0, %c0_i32, %arg1 : i32, i32, i32
  }
  func.func @transform_5(%arg0: i32, %arg1: i32) -> (i32, i32, i32, i32) {
    %c0_i32 = arith.constant 0 : i32
    %c0_i32_0 = arith.constant 0 : i32
    %c0_i32_1 = arith.constant 0 : i32
    return %arg0, %arg1, %c0_i32, %c0_i32_0 : i32, i32, i32, i32
  }
}

</mosaic_0001>

<bundles_post_ra>
// kernel: tpu_custom_call.1
= control target key start
LH: loop header
LB: loop body
LE: loop exit
PB: predicated region body
PF: predicated region fallthrough
CT: control target
= control target key end

     0   :  { %s1615_s0 = inlined_call_operand.<no memory space> [shape: f32[1], index: 0, kind: input, shape index: {}]   ;;  %s1616_s1 = inlined_call_operand.vmem [shape: f32[8,1], index: 1, kind: input, shape index: {}]   ;;  %s1617_s2 = inlined_call_operand.hbm [shape: f32[2,8,1024], index: 2, kind: input, shape index: {}]   ;;  %s1618_s3 = inlined_call_operand.hbm [shape: f32[2,8,1024], index: 3, kind: input, shape index: {}]   ;;  %s1619_s4 = inlined_call_operand.hbm [shape: f32[2,8,1024], index: 4, kind: output, shape index: {0}]   ;;  %s1620_s5 = inlined_call_operand.hbm [shape: f32[2,1,1,1024], index: 5, kind: output, shape index: {1}]  }
   0x1   :  { %11 = sst [smem:[#allocation2]] %s1615_s0 }
   0x2   :  { %12 = vsyncpa [#allocation4], 0 }
   0x3   :  { %14 = vsyncpa [#allocation4 + $0x1], 0 }
   0x4   :  { %15 = vsyncpa [#allocation7], 0 }
   0x5   :  { %17 = vsyncpa [#allocation7 + $0x1], 0 }
   0x6   :  { %18 = vsyncpa [#allocation5], 0 }
   0x7   :  { %20 = vsyncpa [#allocation5 + $0x1], 0 }
   0x8   :  { %21 = vsyncpa [#allocation10], 0 }
   0x9   :  { %23 = vsyncpa [#allocation10 + $0x1], 0  ;;  %s1156_s20 = smov 0   ;;  %s1158_s21 = smov 0  }
   0xa   :  { %s1160_s22 = smov 0   ;;  %s1162_s23 = smov 0  }
   0xb   :  { %s1164_s24 = smov 0   ;;  %s1166_s25 = smov 0  }
   0xc LB: > { %s809_s0 = sadd.s32 4294967295, %s1114_s25   ;;  %s810_s26 = sadd.s32 4294967294, %s1114_s25   ;;  %s1114_s25 = sphi %s1166_s25, %s29_s25   ;;  %s1110_s24 = sphi %s1164_s24, %s1656_s24   ;;  %s1106_s23 = sphi %s1162_s23, %s1655_s23   ;;  %s1102_s22 = sphi %s1160_s22, %s1654_s22   ;;  %s1098_s21 = sphi %s1158_s21, %s1653_s21   ;;  %s1094_s20 = sphi %s1156_s20, %s1652_s20  }
   0xd   : > { %s41_s27 = sadd.s32 1, %s1110_s24  ;;  %s92_s28 = sadd.s32 1, %s1102_s22 }
   0xe   : > { %p43_p0 = scmp.ge.s32.totalorder %s41_s27, 2  ;;  %p99_p1 = scmp.ne.s32.totalorder %s1102_s22, %s1098_s21 }
   0xf   : > { %p100_p2 = scmp.eq.s32.totalorder %s1114_s25, 0  ;;  %p105_p3 = scmp.ne.s32.totalorder %s1098_s21, %s1094_s20 }
  0x10   : > { %s1658_s27 = smov (%p43_p0, %s41_s27), 0  ;;  %p106_p5 = scmp.eq.s32.totalorder %s809_s0, 0 }
  0x11   : > { %p1197_p4 = por %p100_p2, %p99_p1  ;;  %s87_s30 = ssub.s32 %s1110_s24, %s1658_s27 }
  0x12   : > { %p159_p6 = scmp.eq.s32.totalorder %s809_s0, 1  ;;  %p90_p7 = scmp.eq.s32.totalorder %s87_s30, 0 }
  0x13   : > { %p1203_p8 = por %p106_p5, %p105_p3  ;;  %p165_p10 = scmp.eq.s32.totalorder %s810_s26, 1 }
  0x14   : > { %p1207_p9 = por %p159_p6, %p99_p1  ;;  %p866_p13 = scmp.lt.s32.totalorder %s1114_s25, 2 }
  0x15   : > { %s1624_s6 = scalar_select %p1203_p8, 1, 0 }
  0x16   : > { %s1625_s7 = scalar_select %p1207_p9, 1, 0 }
  0x17   : > { %s1212_s8 = scalar_select %p90_p7, %s1102_s22, %s92_s28  }
  0x18   : > { %p1214_p11 = por %p165_p10, %p105_p3  ;;  %s1221_s10 = sand.u32 1, %s1102_s22  }
  0x19   : > { %s813_s11 = sshll.u32 %s1221_s10, 6  ;;  %s840_s12 = sshll.u32 %s1110_s24, 10 }
  0x1a   : > { %s1626_s9 = scalar_select %p1214_p11, 1, 0 }
  0x1b   : > { %s1230_s15 = scalar_lea.hbm %s1617_s2, %s840_s12  ;;  %s223_s16 = scalar_lea.vmem [#allocation3], %s813_s11 }
  0x1c   : > { %s233_s17 = sshll.u32 %s223_s16, 4  ;;  %p1238_p0 = pnand %p866_p13, %p1197_p4  ;;  %s1234_s17 = int_to_ptr.vmem [resolvable:$true] %s233_s17 }
  0x1d   : > { %s220_s19 = scalar_lea.sflag [#allocation4], %s1221_s10  ;;  %s936_s0 = scalar_lea.hbm %s1230_s15, 1024 }
  0x1e   : > { %p937_p3 = scmp.ne.s32.totalorder %s1230_s15, %s936_s0  ;;  %p938_p5 = pneg %p1238_p0 }
  0x1f   : > { %s941_s29 = scalar_lea.hbm %s1617_s2, 2048  ;;  %p942_p4 = scmp.lt.u32.totalorder %s1230_s15, %s1617_s2 }
  0x20   : > { %p939_p6 = pnand %p938_p5, %p937_p3  ;;  %p943_p10 = scmp.lt.u32.totalorder %s941_s29, %s936_s0 }
  0x21   : > { %p945_p12 = scmp.lt.u32.totalorder %s936_s0, %s1230_s15 }
  0x22   : > { %p940_p7 = pneg %p939_p6  ;;  %p944_p13 = por %p943_p10, %p942_p4 }
  0x24   : > { %p946_p1 = por %p945_p12, %p944_p13 }
  0x26   : > { %p947_p2 = pnand %p946_p1, %p940_p7 }
  0x28   : > { %950 = shalt.err (!%p947_p2)
}
  0x29   : > { %s951_s14 = scalar_lea.vmem %s1234_s17, 1024  ;;  %s1116_s16 = smov [#allocation3]  }
  0x2a   : > { %p952_p3 = scmp.ne.s32.totalorder %s1234_s17, %s951_s14  ;;  %s956_s26 = sshll.u32 %s1116_s16, 4  ;;  %s957_s26 = int_to_ptr.vmem [resolvable:$false] %s956_s26 }
  0x2b   : > { %s958_s28 = scalar_lea.vmem %s957_s26, 2048  ;;  %p959_p9 = scmp.lt.s32.totalorder %s1234_s17, %s957_s26 }
  0x2c   : > { %p954_p6 = pnand %p952_p3, %p938_p5  ;;  %p960_p4 = scmp.lt.s32.totalorder %s958_s28, %s951_s14 }
  0x2e   : > { %p955_p11 = pneg %p954_p6  ;;  %p961_p10 = por %p960_p4, %p959_p9 }
  0x30   : > { %p962_p12 = pnand %p961_p10, %p955_p11 }
  0x32   : > { %965 = shalt.err (!%p962_p12)
}
  0x33   : > { %855 = dma.hbm_to_vmem [thread:$0]  (!%p1238_p0), %s1230_s15, 1024, %s1234_s17, %s220_s19  }
  0x34   : > { %p1628_p1 = scmp.lt.s32.totalorder %s1114_s25, 3  ;;  %p1629_p2 = scmp.ge.s32.totalorder %s1114_s25, 1 }
  0x35   : > { %s1283_s13 = scalar_lea.hbm %s1618_s3, %s840_s12  ;;  %s244_s14 = scalar_lea.vmem [#allocation6], %s813_s11 }
  0x36   : > { %p1274_p7 = pnand %p1629_p2, %p1628_p1  ;;  %s254_s16 = sshll.u32 %s244_s14, 4  ;;  %s255_s16 = int_to_ptr.vmem [resolvable:$true] %s254_s16 }
  0x37   : > { %s241_s15 = scalar_lea.sflag [#allocation7], %s1221_s10  ;;  %s966_s17 = scalar_lea.hbm %s1283_s13, 1024 }
  0x38   : > { %s1630_s0 = scalar_select %p1274_p7, 1, 0 }
  0x39   : > { %p967_p9 = scmp.ne.s32.totalorder %s1283_s13, %s966_s17  ;;  %s971_s12 = scalar_lea.hbm %s1618_s3, 2048 }
  0x3a   : > { %p972_p3 = scmp.lt.u32.totalorder %s1283_s13, %s1618_s3  ;;  %p973_p6 = scmp.lt.u32.totalorder %s971_s12, %s966_s17 }
  0x3b   : > { %p969_p11 = pnand %p967_p9, %p938_p5  ;;  %p975_p10 = scmp.lt.u32.totalorder %s966_s17, %s1283_s13 }
  0x3c   : > { %p974_p4 = por %p973_p6, %p972_p3 }
  0x3d   : > { %p970_p13 = pneg %p969_p11 }
  0x3e   : > { %p976_p12 = por %p975_p10, %p974_p4 }
  0x40   : > { %p977_p1 = pnand %p976_p12, %p970_p13 }
  0x42   : > { %980 = shalt.err (!%p977_p1)
}
  0x43   : > { %s981_s10 = scalar_lea.vmem %s255_s16, 1024  ;;  %s1117_s11 = smov [#allocation6]  }
  0x44   : > { %p982_p2 = scmp.ne.s32.totalorder %s255_s16, %s981_s10  ;;  %s986_s30 = sshll.u32 %s1117_s11, 4  ;;  %s987_s30 = int_to_ptr.vmem [resolvable:$false] %s986_s30 }
  0x45   : > { %s988_s14 = scalar_lea.vmem %s987_s30, 2048  ;;  %p989_p8 = scmp.lt.s32.totalorder %s255_s16, %s987_s30 }
  0x46   : > { %p984_p9 = pnand %p982_p2, %p938_p5  ;;  %p990_p7 = scmp.lt.s32.totalorder %s988_s14, %s981_s10 }
  0x48   : > { %p985_p11 = pneg %p984_p9  ;;  %p991_p3 = por %p990_p7, %p989_p8 }
  0x4a   : > { %p992_p6 = pnand %p991_p3, %p985_p11 }
  0x4c   : > { %995 = shalt.err (!%p992_p6)
}
  0x4d   : > { %858 = dma.hbm_to_vmem [thread:$0]  (!%p1238_p0), %s1283_s13, 1024, %s255_s16, %s241_s15  }
  0x4e   : > { %p1631_p13 = scmp.ne.s32.totalorder %s1630_s0, 0 }
  0x4f   : > { %s1310_s17 = sand.u32 (!%p1631_p13), 1, %s1098_s21   ;;  %p1632_p8 = scmp.ne.s32.totalorder (!%p1631_p13), %s1624_s6, 0 }
  0x50   : > { %263 = sbr.rel (%p1631_p13) target bundleno = 259 (0x103), region = 36  ;;  %s1313_s19 = sshll.u32 (!%p1631_p13), %s1310_s17, 6 }
  0x51   : > { %s266_s26 = scalar_lea.sflag (!%p1631_p13), [#allocation4], %s1310_s17  ;;  %s269_s12 = scalar_lea.vmem (!%p1631_p13), [#allocation3], %s1313_s19 }
  0x57   : > { %1077 = dma.done.wait (%p1632_p8), %s266_s26, 1024  }
  0x58   : > { %1079 = vsyncadd (%p1632_p8), %s266_s26, 4294966272  ;;  %s275_s18 = scalar_lea.sflag [#allocation7], %s1310_s17  ;;  %s1323_s0 = scalar_lea.vmem [#allocation6], %s1313_s19 }
  0x59   : > { %1081 = dma.done.wait (%p1632_p8), %s275_s18, 1024  }
  0x5a   : > { %1083 = vsyncadd (%p1632_p8), %s275_s18, 4294966272  ;;  %v1118_v0 = vmov 0   ;;  %v505_v1 = vld [vmem:[%s1616_s1] sm:$0xff]  ;;  %v1334_v3 = vld [vmem:[%s269_s12 + $0x8] sm:$0xff]  ;;  %s439_s6 = sld [smem:[#allocation2]]  ;;  %vm414_vm0 = vcmask 1040384  }
  0x5b   : > { %919 = vset.pattern.permute.xlu0 %v1118_v0  ;;  %v1332_v2 = vld [vmem:[%s269_s12] sm:$0xff]  ;;  %v1336_v4 = vld [vmem:[%s269_s12 + $0x10] sm:$0xff]  ;;  %v1338_v5 = vld [vmem:[%s269_s12 + $0x18] sm:$0xff]  ;;  %v335_v8 = vsub.f32 0.0, %v1334_v3  ;;  %s842_s15 = sshll.u32 %s1106_s23, 10  ;;  %s307_s28 = scalar_lea.vmem [#allocation8], %s1313_s19 }
  0x5c   : > { %508 = vperm.xlu0 %919, %v505_v1   ;;  %v1340_v6 = vld [vmem:[%s269_s12 + $0x20] sm:$0xff]  ;;  %v334_v7 = vsub.f32 0.0, %v1332_v2  ;;  %v1344_v9 = vld [vmem:[%s269_s12 + $0x28] sm:$0xff]  ;;  %v1346_v10 = vld [vmem:[%s269_s12 + $0x30] sm:$0xff]  ;;  %v336_v12 = vsub.f32 0.0, %v1336_v4  ;;  %v337_v13 = vsub.f32 0.0, %v1338_v5  ;;  %s1490_s30 = scalar_lea.hbm %s1619_s4, %s842_s15 }
  0x5d   : > { %v1348_v11 = vld [vmem:[%s269_s12 + $0x38] sm:$0xff]  ;;  %v338_v14 = vsub.f32 0.0, %v1340_v6  ;;  %v339_v15 = vsub.f32 0.0, %v1344_v9  ;;  %v340_v16 = vsub.f32 0.0, %v1346_v10  ;;  %v344_v19 = vmul.f32 1.442695, %v335_v8 }
  0x5e   : > { %v342_v17 = vmul.f32 1.442695, %v334_v7  ;;  %v341_v18 = vsub.f32 0.0, %v1348_v11  ;;  %v346_v20 = vmul.f32 1.442695, %v336_v12  ;;  %v326_v27 = vld [vmem:[%s1323_s0] sm:$0xff] }
  0x5f   : > { %v348_v21 = vmul.f32 1.442695, %v337_v13  ;;  %v350_v22 = vmul.f32 1.442695, %v338_v14  ;;  %v352_v23 = vmul.f32 1.442695, %v339_v15 }
  0x60   : > { %920 = vpow2.f32 %v342_v17  ;;  %v354_v24 = vmul.f32 1.442695, %v340_v16  ;;  %v356_v25 = vmul.f32 1.442695, %v341_v18  ;;  %v327_v29 = vld [vmem:[%s1323_s0 + $0x8] sm:$0xff]  ;;  %v328_v32 = vld [vmem:[%s1323_s0 + $0x10] sm:$0xff]  ;;  %v1362_v46 = vstv %s439_s6 }
  0x61   : > { %922 = vpow2.f32 %v344_v19  ;;  %v329_v35 = vld [vmem:[%s1323_s0 + $0x18] sm:$0xff]  ;;  %v330_v39 = vld [vmem:[%s1323_s0 + $0x20] sm:$0xff]  ;;  %v331_v43 = vld [vmem:[%s1323_s0 + $0x28] sm:$0xff]  ;;  %s648_s29 = sshll.u32 %s307_s28, 4  ;;  %s627_s14 = scalar_lea.sflag [#allocation5], %s1310_s17  ;;  %s1492_s29 = int_to_ptr.vmem [resolvable:$true] %s648_s29 }
  0x62   : > { %924 = vpow2.f32 %v346_v20  ;;  %v332_v48 = vld [vmem:[%s1323_s0 + $0x30] sm:$0xff]  ;;  %v333_v53 = vld [vmem:[%s1323_s0 + $0x38] sm:$0xff]  ;;  %s996_s19 = scalar_lea.vmem %s1492_s29, 1024  ;;  %p1649_p5 = scmp.ne.s32.totalorder %s1625_s7, 0 }
  0x63   : > { %926 = vpow2.f32 %v348_v21  ;;  %p997_p0 = scmp.ne.s32.totalorder %s1492_s29, %s996_s19  ;;  %s1120_s26 = smov [#allocation8]  }
  0x64   : > { %928 = vpow2.f32 %v350_v22  ;;  %s1000_s12 = sshll.u32 %s1120_s26, 4  ;;  %s1001_s12 = int_to_ptr.vmem [resolvable:$false] %s1000_s12 }
  0x65   : > { %930 = vpow2.f32 %v352_v23  ;;  %p998_p7 = pnand %p997_p0, %p1649_p5  ;;  %s1002_s18 = scalar_lea.vmem %s1001_s12, 2048 }
  0x66   : > { %932 = vpow2.f32 %v354_v24  ;;  %p1003_p10 = scmp.lt.s32.totalorder %s1492_s29, %s1001_s12  ;;  %p1004_p12 = scmp.lt.s32.totalorder %s1002_s18, %s996_s19 }
  0x67   : > { %934 = vpow2.f32 %v356_v25  ;;  %p999_p4 = pneg %p998_p7 }
  0x68   : > { %p1005_p1 = por %p1004_p12, %p1003_p10 }
  0x6a   : > { %v921_v26 = vpop.eup %920  ;;  %p1006_p2 = pnand %p1005_p1, %p999_p4 }
  0x6b   : > { %v923_v28 = vpop.eup %922  ;;  %v358_v30 = vadd.f32 1.0, %v921_v26 }
  0x6c   : > { %v925_v31 = vpop.eup %924  ;;  %v359_v33 = vadd.f32 1.0, %v923_v28 }
  0x6d   : > { %v927_v34 = vpop.eup %926  ;;  %v360_v36 = vadd.f32 1.0, %v925_v31  ;;  %v366_v37 = vmul.f32 %v358_v30, %v326_v27 }
  0x6e   : > { %v929_v38 = vpop.eup %928  ;;  %v361_v40 = vadd.f32 1.0, %v927_v34  ;;  %v367_v41 = vmul.f32 %v359_v33, %v327_v29 }
  0x6f   : > { %v931_v42 = vpop.eup %930  ;;  %v362_v44 = vadd.f32 1.0, %v929_v38  ;;  %v368_v45 = vmul.f32 %v360_v36, %v328_v32  ;;  %vm374_vm1 = vcmp.ge.f32.partialorder %v366_v37, 1.0 }
  0x70   : > { %v933_v47 = vpop.eup %932  ;;  %v363_v49 = vadd.f32 1.0, %v931_v42  ;;  %v369_v50 = vmul.f32 %v361_v40, %v329_v35  ;;  %vm375_vm2 = vcmp.ge.f32.partialorder %v367_v41, 1.0  ;;  %v1366_v51 = vsel %vm374_vm1, %v1332_v2, 0.0 }
  0x71   : > { %v935_v52 = vpop.eup %934  ;;  %v364_v54 = vadd.f32 1.0, %v933_v47  ;;  %v370_v55 = vmul.f32 %v362_v44, %v330_v39  ;;  %vm376_vm3 = vcmp.ge.f32.partialorder %v368_v45, 1.0  ;;  %v1370_v56 = vsel %vm375_vm2, %v1334_v3, 0.0 }
  0x72   : > { %v365_v57 = vadd.f32 1.0, %v935_v52  ;;  %v371_v58 = vmul.f32 %v363_v49, %v331_v43  ;;  %vm377_vm4 = vcmp.ge.f32.partialorder %v369_v50, 1.0  ;;  %v1373_v59 = vsel %vm376_vm3, %v1336_v4, 0.0 }
  0x73   : > { %v372_v60 = vmul.f32 %v364_v54, %v332_v48  ;;  %vm378_vm5 = vcmp.ge.f32.partialorder %v370_v55, 1.0  ;;  %v1376_v61 = vsel %vm377_vm4, %v1338_v5, 0.0  ;;  %v398_v62 = vrot.slane %v1366_v51, 7 }
  0x74   : > { %v373_v63 = vmul.f32 %v365_v57, %v333_v53  ;;  %vm379_vm6 = vcmp.ge.f32.partialorder %v371_v58, 1.0  ;;  %v1380_v0 = vsel %vm378_vm5, %v1340_v6, 0.0  ;;  %v399_v1 = vrot.slane %v1370_v56, 7 }
  0x75   : > { %vm380_vm7 = vcmp.ge.f32.partialorder %v372_v60, 1.0  ;;  %v1384_v7 = vsel %vm379_vm6, %v1344_v9, 0.0  ;;  %v400_v8 = vrot.slane %v1373_v59, 7  ;;  %v401_v12 = vrot.slane %v1376_v61, 7 }
  0x76   : > { %vm381_vm8 = vcmp.ge.f32.partialorder %v373_v63, 1.0  ;;  %v1389_v13 = vsel %vm380_vm7, %v1346_v10, 0.0  ;;  %v402_v14 = vrot.slane %v1380_v0, 7  ;;  %v403_v15 = vrot.slane %v1384_v7, 7 }
  0x77   : > { %v1394_v16 = vsel %vm381_vm8, %v1348_v11, 0.0  ;;  %v404_v17 = vrot.slane %v1389_v13, 7  ;;  %v415_v18 = vsel %vm414_vm0, 0.0, %v398_v62  ;;  %v416_v19 = vsel %vm414_vm0, 0.0, %v399_v1 }
  0x78   : > { %v405_v20 = vrot.slane %v1394_v16, 7  ;;  %v417_v21 = vsel %vm414_vm0, 0.0, %v400_v8  ;;  %v418_v22 = vsel %vm414_vm0, 0.0, %v401_v12  ;;  %v419_v23 = vsel %vm414_vm0, 0.0, %v402_v14 }
  0x79   : > { %v420_v24 = vsel %vm414_vm0, 0.0, %v403_v15  ;;  %v421_v25 = vsel %vm414_vm0, 0.0, %v404_v17  ;;  %v423_v26 = vmul.f32 0.25, %v415_v18  ;;  %v424_v27 = vmul.f32 0.25, %v416_v19 }
  0x7a   : > { %v422_v28 = vsel %vm414_vm0, 0.0, %v405_v20  ;;  %v425_v29 = vmul.f32 0.25, %v417_v21  ;;  %v426_v30 = vmul.f32 0.25, %v418_v22  ;;  %v427_v31 = vmul.f32 0.25, %v419_v23 }
  0x7b   : > { %v428_v32 = vmul.f32 0.25, %v420_v24  ;;  %v429_v33 = vmul.f32 0.25, %v421_v25  ;;  %v430_v34 = vmul.f32 0.25, %v422_v28  ;;  %v431_v35 = vadd.f32 %v423_v26, %v1332_v2 }
  0x7c   : > { %v1408_v36 = vadd.f32 %v424_v27, %v1334_v3  ;;  %v1411_v37 = vadd.f32 %v425_v29, %v1336_v4  ;;  %v1414_v38 = vadd.f32 %v426_v30, %v1338_v5  ;;  %v1417_v39 = vadd.f32 %v427_v31, %v1340_v6 }
  0x7d   : > { %v1420_v40 = vadd.f32 %v428_v32, %v1344_v9  ;;  %v1423_v41 = vadd.f32 %v429_v33, %v1346_v10  ;;  %v1426_v2 = vadd.f32 %v430_v34, %v1348_v11  ;;  %v441_v3 = vsub.f32 %v431_v35, %v1362_v46 }
  0x7e   : > { %v442_v4 = vsub.f32 %v1408_v36, %v1362_v46  ;;  %v443_v5 = vsub.f32 %v1411_v37, %v1362_v46  ;;  %v444_v6 = vsub.f32 %v1414_v38, %v1362_v46  ;;  %v445_v9 = vsub.f32 %v1417_v39, %v1362_v46 }
  0x7f   : > { %v446_v10 = vsub.f32 %v1420_v40, %v1362_v46  ;;  %v447_v11 = vsub.f32 %v1423_v41, %v1362_v46  ;;  %v448_v42 = vsub.f32 %v1426_v2, %v1362_v46  ;;  %vm1443_vm9 = vcmp.gt.f32.partialorder %v441_v3, 0.0 }
  0x80   : > { %vm1449_vm10 = vcmp.gt.f32.partialorder %v442_v4, 0.0  ;;  %vm1453_vm11 = vcmp.gt.f32.partialorder %v443_v5, 0.0  ;;  %vm1457_vm12 = vcmp.gt.f32.partialorder %v444_v6, 0.0  ;;  %vm1461_vm13 = vcmp.gt.f32.partialorder %v445_v9, 0.0 }
  0x81   : > { %vm1465_vm14 = vcmp.gt.f32.partialorder %v446_v10, 0.0  ;;  %vm1469_vm15 = vcmp.gt.f32.partialorder %v447_v11, 0.0  ;;  %vm1473_vm0 = vcmp.gt.f32.partialorder %v448_v42, 0.0  ;;  %v1119_v52 = vmov 0.0  }
  0x82   : > { %v824_v53 = vsel %vm1443_vm9, 1.0, %v1119_v52  ;;  %v825_v54 = vsel %vm1449_vm10, 1.0, %v1119_v52  ;;  %v826_v55 = vsel %vm1453_vm11, 1.0, %v1119_v52  ;;  %v827_v57 = vsel %vm1457_vm12, 1.0, %v1119_v52 }
  0x83   : > { %v828_v58 = vsel %vm1461_vm13, 1.0, %v1119_v52  ;;  %473 = vst [vmem:[%s307_s28] sm:$0xff] %v824_v53  ;;  %v829_v60 = vsel %vm1465_vm14, 1.0, %v1119_v52  ;;  %v830_v62 = vsel %vm1469_vm15, 1.0, %v1119_v52  ;;  %v831_v63 = vsel %vm1473_vm0, 1.0, %v1119_v52  ;;  %474 = vst [vmem:[%s307_s28 + $0x8] sm:$0xff] %v825_v54 }
  0x84   : > { %475 = vst [vmem:[%s307_s28 + $0x10] sm:$0xff] %v826_v55  ;;  %476 = vst [vmem:[%s307_s28 + $0x18] sm:$0xff] %v827_v57  ;;  %v481_v1 = vsel %vm1443_vm9, 0.0, %v431_v35  ;;  %v482_v8 = vsel %vm1449_vm10, 0.0, %v1408_v36  ;;  %v483_v12 = vsel %vm1453_vm11, 0.0, %v1411_v37  ;;  %v484_v14 = vsel %vm1457_vm12, 0.0, %v1414_v38 }
  0x85   : > { %477 = vst [vmem:[%s307_s28 + $0x20] sm:$0xff] %v828_v58  ;;  %478 = vst [vmem:[%s307_s28 + $0x28] sm:$0xff] %v829_v60  ;;  %v485_v15 = vsel %vm1461_vm13, 0.0, %v1417_v39  ;;  %v486_v17 = vsel %vm1465_vm14, 0.0, %v1420_v40  ;;  %v487_v18 = vsel %vm1469_vm15, 0.0, %v1423_v41  ;;  %v488_v19 = vsel %vm1473_vm0, 0.0, %v1426_v2 }
  0x86   : > { %479 = vst [vmem:[%s307_s28 + $0x30] sm:$0xff] %v830_v62  ;;  %480 = vst [vmem:[%s307_s28 + $0x38] sm:$0xff] %v831_v63  ;;  %v489_v20 = vsub.f32 %v1366_v51, %v481_v1 }
  0x87   : > { %1009 = shalt.err (!%p1006_p2)
}
  0x88   : > { %s1010_s0 = scalar_lea.hbm %s1490_s30, 1024  ;;  %s1014_s6 = scalar_lea.hbm %s1619_s4, 2048 }
  0x89   : > { %p1011_p9 = scmp.ne.s32.totalorder %s1490_s30, %s1010_s0  ;;  %p1015_p6 = scmp.lt.u32.totalorder %s1490_s30, %s1619_s4 }
  0x8a   : > { %p1016_p13 = scmp.lt.u32.totalorder %s1014_s6, %s1010_s0  ;;  %p1018_p0 = scmp.lt.u32.totalorder %s1010_s0, %s1490_s30 }
  0x8b   : > { %p1012_p11 = pnand %p1011_p9, %p1649_p5 }
  0x8c   : > { %p1017_p8 = por %p1016_p13, %p1015_p6 }
  0x8d   : > { %p1013_p3 = pneg %p1012_p11 }
  0x8e   : > { %p1019_p7 = por %p1018_p0, %p1017_p8 }
  0x90   : > { %p1020_p4 = pnand %p1019_p7, %p1013_p3 }
  0x92   : > { %1023 = shalt.err (!%p1020_p4)
}
  0x93   : > { %848 = dma.vmem_to_hbm [thread:$0]  (%p1649_p5), %s1492_s29, 1024, %s1490_s30, %s627_s14   ;;  %v490_v51 = vsub.f32 %v1370_v56, %v482_v8  ;;  %v491_v21 = vsub.f32 %v1373_v59, %v483_v12  ;;  %v492_v22 = vsub.f32 %v1376_v61, %v484_v14  ;;  %v493_v23 = vsub.f32 %v1380_v0, %v485_v15 }
  0x94   : > { %v494_v24 = vsub.f32 %v1384_v7, %v486_v17  ;;  %v495_v25 = vsub.f32 %v1389_v13, %v487_v18  ;;  %v496_v26 = vsub.f32 %v1394_v16, %v488_v19  ;;  %v1121_v27 = vmov 1966171168   ;;  %s823_s29 = sshll.u32 %s1310_s17, 3  ;;  %s843_s10 = sshll.u32 %s1106_s23, 7 }
  0x95   : > { %v580_v28 = vunpack.c.l.s4 %v1121_v27  ;;  %v582_v29 = vlaneseq  ;;  %v497_v32 = vmul.f32 %v489_v20, %v489_v20  ;;  %v498_v33 = vmul.f32 %v490_v51, %v490_v51  ;;  %s314_s11 = scalar_lea.vmem [#allocation9], %s823_s29  ;;  %s1566_s26 = scalar_lea.hbm %s1620_s5, %s843_s10 }
  0x96   : > { %v499_v56 = vmul.f32 %v491_v21, %v491_v21  ;;  %v500_v34 = vmul.f32 %v492_v22, %v492_v22  ;;  %v501_v59 = vmul.f32 %v493_v23, %v493_v23  ;;  %v502_v35 = vmul.f32 %v494_v24, %v494_v24  ;;  %s664_s30 = sshll.u32 %s314_s11, 4  ;;  %s632_s12 = scalar_lea.sflag [#allocation10], %s1310_s17  ;;  %s1568_s30 = int_to_ptr.vmem [resolvable:$true] %s664_s30 }
  0x97   : > { %v581_v30 = vunpack.c.0.s8 %v580_v28  ;;  %v583_v31 = vshrl.u32 %v582_v29, 7  ;;  %v503_v61 = vmul.f32 %v495_v25, %v495_v25  ;;  %v504_v36 = vmul.f32 %v496_v26, %v496_v26  ;;  %s1024_s18 = scalar_lea.vmem %s1568_s30, 128  ;;  %s1122_s23 = smov [#allocation9]  }
  0x98   : > { %p1025_p10 = scmp.ne.s32.totalorder %s1568_s30, %s1024_s18  ;;  %s1028_s0 = sshll.u32 %s1122_s23, 4  ;;  %s1029_s0 = int_to_ptr.vmem [resolvable:$false] %s1028_s0 }
  0x99   : > { %v1553_v37 = vsub.s32 %v581_v30, %v583_v31  ;;  %s1030_s13 = scalar_lea.vmem %s1029_s0, 256  ;;  %p1031_p2 = scmp.lt.s32.totalorder %s1568_s30, %s1029_s0 }
  0x9a   : > { %p1026_p12 = pnand %p1025_p10, %p1649_p5  ;;  %p1032_p9 = scmp.lt.s32.totalorder %s1030_s13, %s1024_s18 }
  0x9c   : > { %p1027_p1 = pneg %p1026_p12  ;;  %p1033_p11 = por %p1032_p9, %p1031_p2 }
  0x9e   : > { %p1034_p3 = pnand %p1033_p11, %p1027_p1 }
  0xdb   : > { %v509_v0 = vpop.permute.xlu0 %508 }
  0xdc   : > { %v511_v7 = vmul.f32 %v509_v0, %v497_v32  ;;  %v512_v13 = vmul.f32 %v509_v0, %v498_v33  ;;  %v513_v38 = vmul.f32 %v509_v0, %v499_v56  ;;  %v514_v16 = vmul.f32 %v509_v0, %v500_v34 }
  0xdd   : > { %v515_v39 = vmul.f32 %v509_v0, %v501_v59  ;;  %v516_v40 = vmul.f32 %v509_v0, %v502_v35  ;;  %v517_v41 = vmul.f32 %v509_v0, %v503_v61  ;;  %v518_v2 = vmul.f32 %v509_v0, %v504_v36 }
  0xde   : > { %v519_v3 = vrot.slane %v511_v7, 4  ;;  %v525_v4 = vrot.slane %v512_v13, 4  ;;  %v531_v5 = vrot.slane %v513_v38, 4  ;;  %v537_v6 = vrot.slane %v514_v16, 4 }
  0xdf   : > { %v543_v9 = vrot.slane %v515_v39, 4  ;;  %v549_v10 = vrot.slane %v516_v40, 4  ;;  %v555_v11 = vrot.slane %v517_v41, 4  ;;  %v561_v42 = vrot.slane %v518_v2, 4 }
  0xe0   : > { %v520_v43 = vadd.f32 %v519_v3, %v511_v7  ;;  %v526_v44 = vadd.f32 %v525_v4, %v512_v13  ;;  %v532_v45 = vadd.f32 %v531_v5, %v513_v38  ;;  %v538_v47 = vadd.f32 %v537_v6, %v514_v16 }
  0xe1   : > { %v544_v46 = vadd.f32 %v543_v9, %v515_v39  ;;  %v550_v48 = vadd.f32 %v549_v10, %v516_v40  ;;  %v556_v49 = vadd.f32 %v555_v11, %v517_v41  ;;  %v562_v50 = vadd.f32 %v561_v42, %v518_v2 }
  0xe2   : > { %v521_v52 = vrot.slane %v520_v43, 2  ;;  %v527_v53 = vrot.slane %v526_v44, 2  ;;  %v533_v54 = vrot.slane %v532_v45, 2  ;;  %v539_v55 = vrot.slane %v538_v47, 2 }
  0xe3   : > { %v545_v57 = vrot.slane %v544_v46, 2  ;;  %v551_v58 = vrot.slane %v550_v48, 2  ;;  %v557_v60 = vrot.slane %v556_v49, 2  ;;  %v563_v62 = vrot.slane %v562_v50, 2 }
  0xe4   : > { %v522_v63 = vadd.f32 %v521_v52, %v520_v43  ;;  %v528_v1 = vadd.f32 %v527_v53, %v526_v44  ;;  %v534_v8 = vadd.f32 %v533_v54, %v532_v45  ;;  %v540_v12 = vadd.f32 %v539_v55, %v538_v47 }
  0xe5   : > { %v546_v14 = vadd.f32 %v545_v57, %v544_v46  ;;  %v552_v15 = vadd.f32 %v551_v58, %v550_v48  ;;  %v558_v17 = vadd.f32 %v557_v60, %v556_v49  ;;  %v564_v18 = vadd.f32 %v563_v62, %v562_v50 }
  0xe6   : > { %v523_v19 = vrot.slane %v522_v63, 1  ;;  %v529_v20 = vrot.slane %v528_v1, 1  ;;  %v535_v51 = vrot.slane %v534_v8, 1  ;;  %v541_v21 = vrot.slane %v540_v12, 1 }
  0xe7   : > { %v547_v22 = vrot.slane %v546_v14, 1  ;;  %v553_v23 = vrot.slane %v552_v15, 1  ;;  %v559_v24 = vrot.slane %v558_v17, 1  ;;  %v565_v25 = vrot.slane %v564_v18, 1 }
  0xe8   : > { %v524_v26 = vadd.f32 %v523_v19, %v522_v63  ;;  %v530_v27 = vadd.f32 %v529_v20, %v528_v1  ;;  %v536_v28 = vadd.f32 %v535_v51, %v534_v8  ;;  %v542_v29 = vadd.f32 %v541_v21, %v540_v12 }
  0xe9   : > { %v548_v30 = vadd.f32 %v547_v22, %v546_v14  ;;  %v554_v31 = vadd.f32 %v553_v23, %v552_v15  ;;  %v560_v32 = vadd.f32 %v559_v24, %v558_v17  ;;  %v566_v33 = vadd.f32 %v565_v25, %v564_v18 }
  0xea   : > { %v575_v56 = vcombine.low %v524_v26, %v530_v27  ;;  %v576_v34 = vcombine.low %v536_v28, %v542_v29 }
  0xeb   : > { %v577_v59 = vcombine.low %v548_v30, %v554_v31  ;;  %v578_v35 = vcombine.low %v560_v32, %v566_v33 }
  0xec   : > { %v585_v61 = vrot.slane %v575_v56, %v1553_v37  ;;  %v592_v36 = vrot.slane %v576_v34, %v1553_v37 }
  0xed   : > { %v599_v0 = vrot.slane %v577_v59, %v1553_v37  ;;  %v606_v7 = vrot.slane %v578_v35, %v1553_v37 }
  0xee   : > { %v607_v13 = vcombine.low %v585_v61, %v592_v36 }
  0xef   : > { %v608_v38 = vcombine.low %v599_v0, %v606_v7 }
  0xf0   : > { %v615_v16 = vrot.slane %v607_v13, %v1553_v37 }
  0xf1   : > { %v622_v39 = vrot.slane %v608_v38, %v1553_v37 }
  0xf3   : > { %v623_v40 = vcombine.low %v615_v16, %v622_v39 }
  0xf5   : > { %625 = vst [vmem:[%s314_s11] sm:$0xff] %v623_v40 }
  0xf6   : > { %1037 = shalt.err (!%p1034_p3)
}
  0xf7   : > { %s1038_s17 = scalar_lea.hbm %s1566_s26, 128  ;;  %s1042_s15 = scalar_lea.hbm %s1620_s5, 256 }
  0xf8   : > { %p1039_p6 = scmp.ne.s32.totalorder %s1566_s26, %s1038_s17  ;;  %p1043_p0 = scmp.lt.u32.totalorder %s1566_s26, %s1620_s5 }
  0xf9   : > { %p1044_p7 = scmp.lt.u32.totalorder %s1042_s15, %s1038_s17  ;;  %p1046_p10 = scmp.lt.u32.totalorder %s1038_s17, %s1566_s26 }
  0xfa   : > { %p1040_p13 = pnand %p1039_p6, %p1649_p5 }
  0xfb   : > { %p1045_p4 = por %p1044_p7, %p1043_p0 }
  0xfc   : > { %p1041_p8 = pneg %p1040_p13 }
  0xfd   : > { %p1047_p12 = por %p1046_p10, %p1045_p4 }
  0xff   : > { %p1048_p1 = pnand %p1047_p12, %p1041_p8 }
 0x101   : > { %1051 = shalt.err (!%p1048_p1)
}
 0x102   : > { %849 = dma.vmem_to_hbm [thread:$0]  (%p1649_p5), %s1568_s30, 128, %s1566_s26, %s632_s12  }
 0x103 PF: > { %s676_s10 = sand.u32 1, %s1094_s20   ;;  %p1650_p2 = scmp.ne.s32.totalorder %s1626_s9, 0 }
 0x104   : > { %p1651_p9 = scmp.ge.s32.totalorder %s1114_s25, 2  ;;  %s677_s11 = scalar_lea.sflag [#allocation5], %s676_s10 }
 0x106   : > { %p860_p11 = pnand %p1651_p9, %p1650_p2 }
 0x108   : > { %1085 = dma.done.wait (!%p860_p11), %s677_s11, 1024  }
 0x109   : > { %1087 = vsyncadd (!%p860_p11), %s677_s11, 4294966272  ;;  %s686_s14 = scalar_lea.sflag [#allocation10], %s676_s10 }
 0x10a   : > { %1089 = dma.done.wait (!%p860_p11), %s686_s14, 128  }
 0x10b   : > { %1091 = vsyncadd (!%p860_p11), %s686_s14, 4294967168  ;;  %s29_s25 = sadd.s32 1, %s1114_s25   ;;  %s1652_s20 = smov %s1098_s21 }
 0x10c   : > { %p26_p3 = scmp.ge.s32.totalorder %s29_s25, 4   ;;  %s1653_s21 = smov %s1102_s22 }
 0x10d   : > { %s1654_s22 = smov %s1212_s8  ;;  %s1655_s23 = smov %s1110_s24 }
 0x10e   : > { %s1656_s24 = smov %s1658_s27  ;;  %28 = sbr.rel (!%p26_p3) target bundleno = 12 (0xc), region = 111 }
 0x115   :  { %691 = vsyncpa [#allocation4], 1 }
 0x116   :  { %693 = vsyncpa [#allocation4 + $0x1], 1 }
 0x117   :  { %694 = vsyncpa [#allocation7], 1 }
 0x118   :  { %696 = vsyncpa [#allocation7 + $0x1], 1 }
 0x119   :  { %697 = vsyncpa [#allocation5], 1 }
 0x11a   :  { %699 = vsyncpa [#allocation5 + $0x1], 1 }
 0x11b   :  { %700 = vsyncpa [#allocation10], 1 }
 0x11c   :  { %702 = vsyncpa [#allocation10 + $0x1], 1 }

</bundles_post_ra>
